<compile_context>
chip_gen: v6e
topology: v6e:2x2x1
jax: 0.10.0
libtpu: 0.0.40
codegen_flags: <defaults>
</compile_context>

<pallas_src>
import jax
import jax.numpy as jnp
from jax.experimental import pallas as pl
from jax.experimental.pallas import tpu as pltpu


def _round_up(a: int, b: int) -> int:
    return ((a + b - 1) // b) * b


def _patch_embed_kernel(p_ref, w_ref, b_ref, o_ref):
    # p_ref: (TM, Kp) bf16 | w_ref: (Kp, Ep) bf16 | b_ref: (1, Ep) f32
    # o_ref: (TM, Ep) output dtype.  MXU matmul, f32 accumulation, f32 bias add.
    acc = jnp.dot(p_ref[...], w_ref[...], preferred_element_type=jnp.float32)
    o_ref[...] = (acc + b_ref[...]).astype(o_ref.dtype)


def patch_embedding(x, weight, bias, patch_size, *, compute_dtype=jnp.bfloat16):
    """x: (B, C, H, W) NCHW; weight: (E, C, P, P); bias: (E,) -> (B, N, E)."""
    B, C, H, W = x.shape
    E = weight.shape[0]
    P = patch_size
    assert H % P == 0 and W % P == 0
    nh, nw = H // P, W // P
    N = nh * nw
    K = C * P * P
    M = B * N

    # Lane-dense padding of the contraction / output-feature dims.
    Kp = _round_up(K, 128)
    Ep = _round_up(E, 128)

    # MXU-aligned row tile.  Multiple of 256 (covers v5e's 128-row and
    # v6e/v7x's 256-row MXU passes).  512 for large M amortizes the ~0.35us
    # per-grid-step overhead while the double-buffered (TM*Kp bf16 + TM*Ep f32)
    # tiles stay well inside the 32 MiB scoped VMEM (v7x: 64 MiB physical).
    TM = 512 if M >= 1024 else 256
    Mp = _round_up(M, TM)
    grid = (Mp // TM,)

    # ---- layout glue (plain JAX / XLA) -------------------------------------
    # Cast to bf16 first so the patchify transpose moves half the bytes.
    # TODO(synk): fold the patch extraction into the Pallas pipeline itself
    # (grid over (B, nh) with a (1, C, P, W) BlockSpec on NCHW x plus an
    # in-VMEM reorder) to remove this extra HBM round trip entirely.
    xc = x.astype(compute_dtype)
    patches = (
        xc.reshape(B, C, nh, P, nw, P)
        .transpose(0, 2, 4, 1, 3, 5)          # (B, nh, nw, C, P, P)
        .reshape(M, K)
    )
    # Zero padding: padded rows are sliced off afterwards; zero K-padding
    # contributes nothing to the dot product.
    patches = jnp.pad(patches, ((0, Mp - M), (0, Kp - K)))

    w_mat = weight.reshape(E, K).T.astype(compute_dtype)      # (K, E)
    w_mat = jnp.pad(w_mat, ((0, Kp - K), (0, Ep - E)))
    b_mat = jnp.pad(bias.astype(jnp.float32).reshape(1, E), ((0, 0), (0, Ep - E)))

    out_dtype = x.dtype
    out_bytes = jnp.dtype(out_dtype).itemsize
    cost = pl.CostEstimate(
        flops=2 * Mp * Kp * Ep,
        transcendentals=0,
        bytes_accessed=(Mp * Kp * 2) + (Kp * Ep * 2) + (Ep * 4) + (Mp * Ep * out_bytes),
    )

    def _call(single_buffer_params: bool):
        # Weight/bias have constant index maps; single-buffering them saves a
        # full extra VMEM copy (most relevant on v7x's halved VMEM).
        extra = dict(pipeline_mode=pl.Buffered(1)) if single_buffer_params else {}
        return pl.pallas_call(
            _patch_embed_kernel,
            out_shape=jax.ShapeDtypeStruct((Mp, Ep), out_dtype),
            grid_spec=pltpu.PrefetchScalarGridSpec(
                num_scalar_prefetch=0,
                grid=grid,
                in_specs=[
                    pl.BlockSpec((TM, Kp), lambda i: (i, 0)),
                    pl.BlockSpec((Kp, Ep), lambda i: (0, 0), **extra),
                    pl.BlockSpec((1, Ep), lambda i: (0, 0), **extra),
                ],
                out_specs=pl.BlockSpec((TM, Ep), lambda i: (i, 0)),
            ),
            compiler_params=pltpu.CompilerParams(
                dimension_semantics=("parallel",),
            ),
            cost_estimate=cost,
        )(patches, w_mat, b_mat)

    try:
        out = _call(True)
    except Exception:
        # Fallback for JAX versions where pipeline_mode on a BlockSpec is not
        # supported by the TPU pallas_call pipeline (double-buffers instead).
        out = _call(False)

    return out[:M, :E].reshape(B, N, E)


def _reference(x, weight, bias, patch_size):
    # Pure-JAX reference via conv (NCHW, OIHW), matching nn.Conv2d.
    y = jax.lax.conv_general_dilated(
        x, weight,
        window_strides=(patch_size, patch_size),
        padding="VALID",
        dimension_numbers=("NCHW", "OIHW", "NCHW"),
        precision=jax.lax.Precision.HIGHEST,
    ) + bias.reshape(1, -1, 1, 1)
    B, E, nh, nw = y.shape
    return y.reshape(B, E, nh * nw).transpose(0, 2, 1)


if __name__ == "__main__":
    # Small shapes consistent with the module: B=2, C=4, H=W=16, P=4, E=32.
    B, C, H, W = 2, 4, 16, 16
    P, E = 4, 32

    key = jax.random.PRNGKey(0)
    kx, kw, kb = jax.random.split(key, 3)
    x = jax.random.normal(kx, (B, C, H, W), dtype=jnp.float32)
    # Deterministic "Conv2d" parameters (synthetic init, not a checkpoint).
    weight = jax.random.normal(kw, (E, C, P, P), dtype=jnp.float32) * 0.02
    bias = jax.random.normal(kb, (E,), dtype=jnp.float32) * 0.02

    out = patch_embedding(x, weight, bias, P)
    out = jax.block_until_ready(out)

    # Reference on bf16-quantized inputs: the kernel feeds bf16 operands to the
    # MXU with f32 accumulation, so compare against the same quantization.
    xq = x.astype(jnp.bfloat16).astype(jnp.float32)
    wq = weight.astype(jnp.bfloat16).astype(jnp.float32)
    ref = _reference(xq, wq, bias, P)

    assert out.shape == (B, (H // P) * (W // P), E)
    assert out.dtype == jnp.float32
    assert jnp.allclose(out, ref, atol=1e-3, rtol=1e-3)

    print("KERNEL_OK")
</pallas_src>

<mosaic_0001>
module attributes {stable_mosaic.version = 11 : i64} {
  func.func @_patch_embed_kernel(%arg0: i32, %arg1: memref<256x128xbf16, #tpu.memory_space<vmem>>, %arg2: memref<128x128xbf16, #tpu.memory_space<vmem>>, %arg3: memref<1x128xf32, #tpu.memory_space<vmem>>, %arg4: memref<256x128xf32, #tpu.memory_space<vmem>>) attributes {dimension_semantics = [#tpu.dimension_semantics<parallel>], iteration_bounds = array<i64: 1>, scalar_prefetch = 0 : i64, scratch_operands = 0 : i64, tpu.core_type = #tpu.core_type<tc>, window_params = [{transform_indices = @transform_0, window_bounds = array<i64: 256, 128>}, {pipeline_mode = #tpu.pipeline_mode<synchronous>, transform_indices = @transform_1, window_bounds = array<i64: 128, 128>}, {pipeline_mode = #tpu.pipeline_mode<synchronous>, transform_indices = @transform_2, window_bounds = array<i64: 1, 128>}, {transform_indices = @transform_3, window_bounds = array<i64: 256, 128>}]} {
    %c0 = arith.constant 0 : index
    %c0_0 = arith.constant 0 : index
    %0 = vector.load %arg1[%c0, %c0_0] : memref<256x128xbf16, #tpu.memory_space<vmem>>, vector<256x128xbf16>
    %c0_1 = arith.constant 0 : index
    %c0_2 = arith.constant 0 : index
    %1 = vector.load %arg2[%c0_1, %c0_2] : memref<128x128xbf16, #tpu.memory_space<vmem>>, vector<128x128xbf16>
    %cst = arith.constant dense<0.000000e+00> : vector<256x128xf32>
    %2 = tpu.matmul %0, %1, %cst {dimension_numbers = #tpu.dot_dimension_numbers<[1], [0], [0], [1], [0, 0, 1, 1], [], []>} : vector<256x128xbf16>, vector<128x128xbf16>, vector<256x128xf32> -> vector<256x128xf32>
    %c0_3 = arith.constant 0 : index
    %c0_4 = arith.constant 0 : index
    %3 = vector.load %arg3[%c0_3, %c0_4] : memref<1x128xf32, #tpu.memory_space<vmem>>, vector<1x128xf32>
    %4 = vector.broadcast %3 : vector<1x128xf32> to vector<256x128xf32>
    %5 = arith.addf %2, %4 : vector<256x128xf32>
    %c0_5 = arith.constant 0 : index
    %c0_6 = arith.constant 0 : index
    %6 = vector.load %arg4[%c0_5, %c0_6] : memref<256x128xf32, #tpu.memory_space<vmem>>, vector<256x128xf32>
    tpu.vector_store %arg4[%c0_5, %c0_6], %5 {strides = array<i32>} : memref<256x128xf32, #tpu.memory_space<vmem>>, vector<256x128xf32>,
    return
  }
  func.func @transform_0(%arg0: i32) -> (i32, i32) {
    %c0_i32 = arith.constant 0 : i32
    %c0_i32_0 = arith.constant 0 : i32
    return %arg0, %c0_i32 : i32, i32
  }
  func.func @transform_1(%arg0: i32) -> (i32, i32) {
    %c0_i32 = arith.constant 0 : i32
    %c0_i32_0 = arith.constant 0 : i32
    %c0_i32_1 = arith.constant 0 : i32
    return %c0_i32, %c0_i32_0 : i32, i32
  }
  func.func @transform_2(%arg0: i32) -> (i32, i32) {
    %c0_i32 = arith.constant 0 : i32
    %c0_i32_0 = arith.constant 0 : i32
    %c0_i32_1 = arith.constant 0 : i32
    return %c0_i32, %c0_i32_0 : i32, i32
  }
  func.func @transform_3(%arg0: i32) -> (i32, i32) {
    %c0_i32 = arith.constant 0 : i32
    %c0_i32_0 = arith.constant 0 : i32
    return %arg0, %c0_i32 : i32, i32
  }
}

module attributes {stable_mosaic.version = 11 : i64} {
  func.func @_patch_embed_kernel(%arg0: i32, %arg1: memref<256x128xbf16, #tpu.memory_space<vmem>>, %arg2: memref<128x128xbf16, #tpu.memory_space<vmem>>, %arg3: memref<1x128xf32, #tpu.memory_space<vmem>>, %arg4: memref<256x128xf32, #tpu.memory_space<vmem>>) attributes {dimension_semantics = [#tpu.dimension_semantics<parallel>], iteration_bounds = array<i64: 1>, scalar_prefetch = 0 : i64, scratch_operands = 0 : i64, tpu.core_type = #tpu.core_type<tc>, window_params = [{transform_indices = @transform_0, window_bounds = array<i64: 256, 128>}, {pipeline_mode = #tpu.pipeline_mode<synchronous>, transform_indices = @transform_1, window_bounds = array<i64: 128, 128>}, {pipeline_mode = #tpu.pipeline_mode<synchronous>, transform_indices = @transform_2, window_bounds = array<i64: 1, 128>}, {transform_indices = @transform_3, window_bounds = array<i64: 256, 128>}]} {
    %c0 = arith.constant 0 : index
    %c0_0 = arith.constant 0 : index
    %0 = vector.load %arg1[%c0, %c0_0] : memref<256x128xbf16, #tpu.memory_space<vmem>>, vector<256x128xbf16>
    %c0_1 = arith.constant 0 : index
    %c0_2 = arith.constant 0 : index
    %1 = vector.load %arg2[%c0_1, %c0_2] : memref<128x128xbf16, #tpu.memory_space<vmem>>, vector<128x128xbf16>
    %cst = arith.constant dense<0.000000e+00> : vector<256x128xf32>
    %2 = tpu.matmul %0, %1, %cst {dimension_numbers = #tpu.dot_dimension_numbers<[1], [0], [0], [1], [0, 0, 1, 1], [], []>} : vector<256x128xbf16>, vector<128x128xbf16>, vector<256x128xf32> -> vector<256x128xf32>
    %c0_3 = arith.constant 0 : index
    %c0_4 = arith.constant 0 : index
    %3 = vector.load %arg3[%c0_3, %c0_4] : memref<1x128xf32, #tpu.memory_space<vmem>>, vector<1x128xf32>
    %4 = vector.broadcast %3 : vector<1x128xf32> to vector<256x128xf32>
    %5 = arith.addf %2, %4 : vector<256x128xf32>
    %c0_5 = arith.constant 0 : index
    %c0_6 = arith.constant 0 : index
    %6 = vector.load %arg4[%c0_5, %c0_6] : memref<256x128xf32, #tpu.memory_space<vmem>>, vector<256x128xf32>
    tpu.vector_store %arg4[%c0_5, %c0_6], %5 {strides = array<i32>} : memref<256x128xf32, #tpu.memory_space<vmem>>, vector<256x128xf32>,
    return
  }
  func.func @transform_0(%arg0: i32) -> (i32, i32) {
    %c0_i32 = arith.constant 0 : i32
    %c0_i32_0 = arith.constant 0 : i32
    return %arg0, %c0_i32 : i32, i32
  }
  func.func @transform_1(%arg0: i32) -> (i32, i32) {
    %c0_i32 = arith.constant 0 : i32
    %c0_i32_0 = arith.constant 0 : i32
    %c0_i32_1 = arith.constant 0 : i32
    return %c0_i32, %c0_i32_0 : i32, i32
  }
  func.func @transform_2(%arg0: i32) -> (i32, i32) {
    %c0_i32 = arith.constant 0 : i32
    %c0_i32_0 = arith.constant 0 : i32
    %c0_i32_1 = arith.constant 0 : i32
    return %c0_i32, %c0_i32_0 : i32, i32
  }
  func.func @transform_3(%arg0: i32) -> (i32, i32) {
    %c0_i32 = arith.constant 0 : i32
    %c0_i32_0 = arith.constant 0 : i32
    return %arg0, %c0_i32 : i32, i32
  }
}

</mosaic_0001>

<bundles_post_ra>
// kernel: tpu_custom_call.1
= control target key start
LH: loop header
LB: loop body
LE: loop exit
PB: predicated region body
PF: predicated region fallthrough
CT: control target
= control target key end

     0   :  { %8 = vsyncpa [#allocation3], 0  ;;  %s737_s0 = inlined_call_operand.hbm [shape: bf16[256,128], index: 0, kind: input, shape index: {}]   ;;  %s738_s1 = inlined_call_operand.hbm [shape: bf16[128,128], index: 1, kind: input, shape index: {}]   ;;  %s739_s2 = inlined_call_operand.vmem [shape: f32[1,128], index: 2, kind: input, shape index: {}]   ;;  %s740_s3 = inlined_call_operand.hbm [shape: f32[256,128], index: 3, kind: output, shape index: {}]  }
   0x1   :  { %9 = vsyncpa [#allocation6], 0 }
   0x2   :  { %10 = vsyncpa [#allocation4], 0  ;;  %s664_s12 = smov [#allocation2]  }
   0x3   :  { %s16_s13 = sshll.u32 %s664_s12, 4  ;;  %s17_s13 = int_to_ptr.vmem [resolvable:$true] %s16_s13 }
   0x4   :  { %s606_s14 = scalar_lea.vmem %s17_s13, 2048  ;;  %p611_p1 = scmp.lt.s32.totalorder %s17_s13, %s17_s13 }
   0x5   :  { %p607_p0 = scmp.ne.s32.totalorder %s17_s13, %s606_s14  ;;  %p612_p2 = scmp.lt.s32.totalorder %s606_s14, %s606_s14 }
   0x7   :  { %p613_p3 = por %p612_p2, %p611_p1 }
   0x9   :  { %p614_p4 = pnand %p613_p3, %p607_p0 }
   0xb   :  { %617 = shalt.err (!%p614_p4)
}
   0xc   :  { %s665_s15 = smov 64   ;;  %s666_s16 = smov 4  }
   0xd   :  { %22 = dma.hbm_to_vmem [thread:$0]  %s737_s0, 2048, %s17_s13, [#allocation3], %s665_s15, %s665_s15, %s666_s16  }
   0xe   :  { %s667_s19 = smov [#allocation5]  }
   0xf   :  { %s28_s20 = sshll.u32 %s667_s19, 4  ;;  %s29_s20 = int_to_ptr.vmem [resolvable:$true] %s28_s20 }
  0x10   :  { %s626_s21 = scalar_lea.vmem %s29_s20, 1024  ;;  %p631_p6 = scmp.lt.s32.totalorder %s29_s20, %s29_s20 }
  0x11   :  { %p627_p5 = scmp.ne.s32.totalorder %s29_s20, %s626_s21  ;;  %p632_p7 = scmp.lt.s32.totalorder %s626_s21, %s626_s21 }
  0x13   :  { %p633_p8 = por %p632_p7, %p631_p6 }
  0x15   :  { %p634_p9 = pnand %p633_p8, %p627_p5 }
  0x17   :  { %637 = shalt.err (!%p634_p9)
}
  0x18   :  { %34 = dma.hbm_to_vmem [thread:$0]  %s738_s1, 1024, %s29_s20, [#allocation6], %s665_s15, %s665_s15, %s666_s16  }
  0x19   :  { %658 = dma.done.wait [#allocation3], 2048  }
  0x1a   :  { %659 = vsyncadd [#allocation3], 4294965248 }
  0x1b   :  { %660 = dma.done.wait [#allocation6], 1024  }
  0x1c   :  { %661 = vsyncadd [#allocation6], 4294966272  ;;  %v574_v0 = vld [vmem:[#allocation5 + $0x38] sm:$0xff]   ;;  %v575_v1 = vld [vmem:[#allocation5 + $0x30] sm:$0xff]  }
  0x1d   :  { %503 = vmatprep.subr.bf16.mxu0 %v574_v0  ;;  %551 = vmatprep.subr.bf16.mxu1 %v574_v0  ;;  %v576_v2 = vld [vmem:[#allocation5 + $0x28] sm:$0xff]   ;;  %v577_v3 = vld [vmem:[#allocation5 + $0x20] sm:$0xff]   ;;  %v578_v6 = vld [vmem:[#allocation5 + $0x18] sm:$0xff]  }
  0x1e   :  { %504 = vmatpush3.bf16.msra.mxu0 %v574_v0  ;;  %559 = vmatpush3.bf16.msra.mxu1 %v574_v0  ;;  %v582_v4 = vld [vmem:[#allocation2] sm:$0xff]   ;;  %v579_v7 = vld [vmem:[#allocation5 + $0x10] sm:$0xff]   ;;  %v580_v8 = vld [vmem:[#allocation5 + $0x8] sm:$0xff]  }
  0x1f   :  { %505 = vmatprep.subr.bf16.mxu0 %v575_v1  ;;  %552 = vmatprep.subr.bf16.mxu1 %v575_v1  ;;  %v583_v5 = vld [vmem:[#allocation2 + $0x40] sm:$0xff]   ;;  %v584_v10 = vld [vmem:[#allocation2 + $0x8] sm:$0xff]   ;;  %v586_v12 = vld [vmem:[#allocation2 + $0x10] sm:$0xff]  }
  0x20   :  { %519 = vmatprep.mubr.bf16.mxu0 %v582_v4  ;;  %535 = vmatprep.mubr.bf16.mxu1 %v583_v5  ;;  %v581_v9 = vld [vmem:[#allocation5] sm:$0xff]   ;;  %v585_v11 = vld [vmem:[#allocation2 + $0x48] sm:$0xff]   ;;  %v587_v13 = vld [vmem:[#allocation2 + $0x50] sm:$0xff]  }
  0x21   :  { %v588_v14 = vld [vmem:[#allocation2 + $0x18] sm:$0xff]   ;;  %v590_v16 = vld [vmem:[#allocation2 + $0x20] sm:$0xff]   ;;  %v592_v18 = vld [vmem:[#allocation2 + $0x28] sm:$0xff]  }
  0x22   :  { %506 = vmatpush3.bf16.msra.mxu0 %v575_v1  ;;  %560 = vmatpush3.bf16.msra.mxu1 %v575_v1  ;;  %v589_v15 = vld [vmem:[#allocation2 + $0x58] sm:$0xff]   ;;  %v591_v17 = vld [vmem:[#allocation2 + $0x60] sm:$0xff]   ;;  %v593_v19 = vld [vmem:[#allocation2 + $0x68] sm:$0xff]  }
  0x23   :  { %507 = vmatprep.subr.bf16.mxu0 %v576_v2  ;;  %553 = vmatprep.subr.bf16.mxu1 %v576_v2  ;;  %v594_v20 = vld [vmem:[#allocation2 + $0x30] sm:$0xff]   ;;  %v596_v22 = vld [vmem:[#allocation2 + $0x38] sm:$0xff]   ;;  %v700_v24 = vld [vmem:[%s739_s2] ss:$0 sm:$0xff]  ;;  %s668_s2 = smov [#allocation7]  }
  0x24   :  { %v595_v21 = vld [vmem:[#allocation2 + $0x70] sm:$0xff]   ;;  %v597_v23 = vld [vmem:[#allocation2 + $0x78] sm:$0xff]   ;;  %s441_s24 = sshll.u32 %s668_s2, 4  ;;  %s442_s24 = int_to_ptr.vmem [resolvable:$true] %s441_s24 }
  0x25   :  { %s638_s25 = scalar_lea.vmem %s442_s24, 4096  ;;  %p643_p11 = scmp.lt.s32.totalorder %s442_s24, %s442_s24 }
  0x26   :  { %508 = vmatpush3.bf16.msra.mxu0 %v576_v2  ;;  %561 = vmatpush3.bf16.msra.mxu1 %v576_v2  ;;  %p639_p10 = scmp.ne.s32.totalorder %s442_s24, %s638_s25  ;;  %p644_p12 = scmp.lt.s32.totalorder %s638_s25, %s638_s25 }
  0x27   :  { %509 = vmatprep.subr.bf16.mxu0 %v577_v3  ;;  %554 = vmatprep.subr.bf16.mxu1 %v577_v3 }
  0x28   :  { %p645_p13 = por %p644_p12, %p643_p11 }
  0x2a   :  { %510 = vmatpush3.bf16.msra.mxu0 %v577_v3  ;;  %562 = vmatpush3.bf16.msra.mxu1 %v577_v3  ;;  %p646_p0 = pnand %p645_p13, %p639_p10 }
  0x2b   :  { %511 = vmatprep.subr.bf16.mxu0 %v578_v6  ;;  %555 = vmatprep.subr.bf16.mxu1 %v578_v6 }
  0x2e   :  { %512 = vmatpush3.bf16.msra.mxu0 %v578_v6  ;;  %563 = vmatpush3.bf16.msra.mxu1 %v578_v6 }
  0x2f   :  { %513 = vmatprep.subr.bf16.mxu0 %v579_v7  ;;  %556 = vmatprep.subr.bf16.mxu1 %v579_v7 }
  0x32   :  { %514 = vmatpush3.bf16.msra.mxu0 %v579_v7  ;;  %564 = vmatpush3.bf16.msra.mxu1 %v579_v7 }
  0x33   :  { %515 = vmatprep.subr.bf16.mxu0 %v580_v8  ;;  %557 = vmatprep.subr.bf16.mxu1 %v580_v8 }
  0x36   :  { %516 = vmatpush3.bf16.msra.mxu0 %v580_v8  ;;  %565 = vmatpush3.bf16.msra.mxu1 %v580_v8 }
  0x37   :  { %517 = vmatprep.subr.bf16.mxu0 %v581_v9  ;;  %558 = vmatprep.subr.bf16.mxu1 %v581_v9 }
  0x3a   :  { %518 = vmatpush3.bf16.msra.mxu0 %v581_v9  ;;  %566 = vmatpush3.bf16.msra.mxu1 %v581_v9 }
  0x3d   :  { %520 = vmatmul.mubr.bf16.vlgmr.msra.gmra.mxu0 %v584_v10  ;;  %536 = vmatmul.mubr.bf16.vlgmr.msra.gmra.mxu1 %v585_v11 }
  0x3e   :  { %523 = vmatprep.mubr.bf16.mxu0 %v586_v12  ;;  %539 = vmatprep.mubr.bf16.mxu1 %v587_v13 }
  0x45   :  { %524 = vmatmul.mubr.bf16.gmra.mxu0 %v588_v14  ;;  %540 = vmatmul.mubr.bf16.gmra.mxu1 %v589_v15 }
  0x46   :  { %527 = vmatprep.mubr.bf16.mxu0 %v590_v16  ;;  %543 = vmatprep.mubr.bf16.mxu1 %v591_v17 }
  0x4d   :  { %528 = vmatmul.mubr.bf16.gmra.mxu0 %v592_v18  ;;  %544 = vmatmul.mubr.bf16.gmra.mxu1 %v593_v19 }
  0x4e   :  { %531 = vmatprep.mubr.bf16.mxu0 %v594_v20  ;;  %547 = vmatprep.mubr.bf16.mxu1 %v595_v21 }
  0x55   :  { %532 = vmatmul.mubr.bf16.gmra.mxu0 %v596_v22  ;;  %548 = vmatmul.mubr.bf16.gmra.mxu1 %v597_v23 }
  0xfd   :  { %v521_v25 = vpop.f32.mrf.mxu0  ;;  %v537_v26 = vpop.f32.mrf.mxu1 }
  0xfe   :  { %v286_v27 = vadd.f32 %v521_v25, %v700_v24  ;;  %v350_v28 = vadd.f32 %v537_v26, %v700_v24 }
  0xff   :  { %v277_v29 = vpop.f32.mrf.mxu0  ;;  %v341_v30 = vpop.f32.mrf.mxu1 }
 0x100   :  { %406 = vst [vmem:[#allocation7 + $0x10] sm:$0xff] %v286_v27  ;;  %422 = vst [vmem:[#allocation7 + $0x90] sm:$0xff] %v350_v28  ;;  %v278_v31 = vadd.f32 %v700_v24, %v277_v29  ;;  %v342_v32 = vadd.f32 %v700_v24, %v341_v30 }
 0x101   :  { %v522_v33 = vpop.f32.mrf.mxu0  ;;  %v538_v34 = vpop.f32.mrf.mxu1 }
 0x102   :  { %404 = vst [vmem:[#allocation7] sm:$0xff] %v278_v31  ;;  %420 = vst [vmem:[#allocation7 + $0x80] sm:$0xff] %v342_v32  ;;  %v289_v35 = vadd.f32 %v522_v33, %v700_v24  ;;  %v353_v36 = vadd.f32 %v538_v34, %v700_v24 }
 0x103   :  { %v280_v37 = vpop.f32.mrf.mxu0  ;;  %v344_v38 = vpop.f32.mrf.mxu1 }
 0x104   :  { %407 = vst [vmem:[#allocation7 + $0x18] sm:$0xff] %v289_v35  ;;  %423 = vst [vmem:[#allocation7 + $0x98] sm:$0xff] %v353_v36  ;;  %v281_v39 = vadd.f32 %v700_v24, %v280_v37  ;;  %v345_v40 = vadd.f32 %v700_v24, %v344_v38 }
 0x105   :  { %v525_v41 = vpop.f32.mrf.mxu0  ;;  %v541_v42 = vpop.f32.mrf.mxu1 }
 0x106   :  { %405 = vst [vmem:[#allocation7 + $0x8] sm:$0xff] %v281_v39  ;;  %421 = vst [vmem:[#allocation7 + $0x88] sm:$0xff] %v345_v40  ;;  %v302_v43 = vadd.f32 %v525_v41, %v700_v24  ;;  %v366_v44 = vadd.f32 %v541_v42, %v700_v24 }
 0x107   :  { %v293_v45 = vpop.f32.mrf.mxu0  ;;  %v357_v46 = vpop.f32.mrf.mxu1 }
 0x108   :  { %410 = vst [vmem:[#allocation7 + $0x30] sm:$0xff] %v302_v43  ;;  %426 = vst [vmem:[#allocation7 + $0xb0] sm:$0xff] %v366_v44  ;;  %v294_v47 = vadd.f32 %v700_v24, %v293_v45  ;;  %v358_v48 = vadd.f32 %v700_v24, %v357_v46 }
 0x109   :  { %v526_v49 = vpop.f32.mrf.mxu0  ;;  %v542_v50 = vpop.f32.mrf.mxu1 }
 0x10a   :  { %408 = vst [vmem:[#allocation7 + $0x20] sm:$0xff] %v294_v47  ;;  %424 = vst [vmem:[#allocation7 + $0xa0] sm:$0xff] %v358_v48  ;;  %v305_v51 = vadd.f32 %v526_v49, %v700_v24  ;;  %v369_v52 = vadd.f32 %v542_v50, %v700_v24 }
 0x10b   :  { %v296_v53 = vpop.f32.mrf.mxu0  ;;  %v360_v54 = vpop.f32.mrf.mxu1 }
 0x10c   :  { %411 = vst [vmem:[#allocation7 + $0x38] sm:$0xff] %v305_v51  ;;  %427 = vst [vmem:[#allocation7 + $0xb8] sm:$0xff] %v369_v52  ;;  %v297_v55 = vadd.f32 %v700_v24, %v296_v53  ;;  %v361_v56 = vadd.f32 %v700_v24, %v360_v54 }
 0x10d   :  { %v529_v57 = vpop.f32.mrf.mxu0  ;;  %v545_v58 = vpop.f32.mrf.mxu1 }
 0x10e   :  { %409 = vst [vmem:[#allocation7 + $0x28] sm:$0xff] %v297_v55  ;;  %425 = vst [vmem:[#allocation7 + $0xa8] sm:$0xff] %v361_v56  ;;  %v318_v59 = vadd.f32 %v529_v57, %v700_v24  ;;  %v382_v60 = vadd.f32 %v545_v58, %v700_v24 }
 0x10f   :  { %v309_v61 = vpop.f32.mrf.mxu0  ;;  %v373_v62 = vpop.f32.mrf.mxu1 }
 0x110   :  { %414 = vst [vmem:[#allocation7 + $0x50] sm:$0xff] %v318_v59  ;;  %430 = vst [vmem:[#allocation7 + $0xd0] sm:$0xff] %v382_v60  ;;  %v310_v63 = vadd.f32 %v700_v24, %v309_v61  ;;  %v374_v0 = vadd.f32 %v700_v24, %v373_v62 }
 0x111   :  { %v530_v1 = vpop.f32.mrf.mxu0  ;;  %v546_v2 = vpop.f32.mrf.mxu1 }
 0x112   :  { %412 = vst [vmem:[#allocation7 + $0x40] sm:$0xff] %v310_v63  ;;  %428 = vst [vmem:[#allocation7 + $0xc0] sm:$0xff] %v374_v0  ;;  %v321_v3 = vadd.f32 %v530_v1, %v700_v24  ;;  %v385_v4 = vadd.f32 %v546_v2, %v700_v24 }
 0x113   :  { %v312_v5 = vpop.f32.mrf.mxu0  ;;  %v376_v6 = vpop.f32.mrf.mxu1 }
 0x114   :  { %415 = vst [vmem:[#allocation7 + $0x58] sm:$0xff] %v321_v3  ;;  %431 = vst [vmem:[#allocation7 + $0xd8] sm:$0xff] %v385_v4  ;;  %v313_v7 = vadd.f32 %v700_v24, %v312_v5  ;;  %v377_v8 = vadd.f32 %v700_v24, %v376_v6 }
 0x115   :  { %v533_v9 = vpop.f32.mrf.mxu0  ;;  %v549_v10 = vpop.f32.mrf.mxu1 }
 0x116   :  { %413 = vst [vmem:[#allocation7 + $0x48] sm:$0xff] %v313_v7  ;;  %429 = vst [vmem:[#allocation7 + $0xc8] sm:$0xff] %v377_v8  ;;  %v334_v11 = vadd.f32 %v533_v9, %v700_v24  ;;  %v398_v12 = vadd.f32 %v549_v10, %v700_v24 }
 0x117   :  { %v325_v13 = vpop.f32.mrf.mxu0  ;;  %v389_v14 = vpop.f32.mrf.mxu1 }
 0x118   :  { %418 = vst [vmem:[#allocation7 + $0x70] sm:$0xff] %v334_v11  ;;  %434 = vst [vmem:[#allocation7 + $0xf0] sm:$0xff] %v398_v12  ;;  %v326_v15 = vadd.f32 %v700_v24, %v325_v13  ;;  %v390_v16 = vadd.f32 %v700_v24, %v389_v14 }
 0x119   :  { %v534_v17 = vpop.f32.mrf.mxu0  ;;  %v550_v18 = vpop.f32.mrf.mxu1 }
 0x11a   :  { %416 = vst [vmem:[#allocation7 + $0x60] sm:$0xff] %v326_v15  ;;  %432 = vst [vmem:[#allocation7 + $0xe0] sm:$0xff] %v390_v16  ;;  %v337_v19 = vadd.f32 %v534_v17, %v700_v24  ;;  %v401_v20 = vadd.f32 %v550_v18, %v700_v24 }
 0x11b   :  { %v328_v21 = vpop.f32.mrf.mxu0  ;;  %v392_v22 = vpop.f32.mrf.mxu1 }
 0x11c   :  { %419 = vst [vmem:[#allocation7 + $0x78] sm:$0xff] %v337_v19  ;;  %435 = vst [vmem:[#allocation7 + $0xf8] sm:$0xff] %v401_v20  ;;  %v329_v23 = vadd.f32 %v700_v24, %v328_v21  ;;  %v393_v25 = vadd.f32 %v700_v24, %v392_v22 }
 0x11e   :  { %417 = vst [vmem:[#allocation7 + $0x68] sm:$0xff] %v329_v23  ;;  %433 = vst [vmem:[#allocation7 + $0xe8] sm:$0xff] %v393_v25 }
 0x11f   :  { %649 = shalt.err (!%p646_p0)
}
 0x120   :  { %s669_s26 = smov 128   ;;  %s670_s27 = smov 8  }
 0x121   :  { %447 = dma.vmem_to_hbm [thread:$0]  %s442_s24, 4096, %s740_s3, [#allocation4], %s669_s26, %s669_s26, %s670_s27  }
 0x122   :  { %662 = dma.done.wait [#allocation4], 4096  }
 0x123   :  { %663 = vsyncadd [#allocation4], 4294963200 }
 0x124   :  { %451 = vsyncpa [#allocation3], 1 }
 0x125   :  { %452 = vsyncpa [#allocation6], 1 }
 0x126   :  { %453 = vsyncpa [#allocation4], 1 }

// kernel: tpu_custom_call.1
= control target key start
LH: loop header
LB: loop body
LE: loop exit
PB: predicated region body
PF: predicated region fallthrough
CT: control target
= control target key end

     0   :  { %8 = vsyncpa [#allocation3], 0  ;;  %s737_s0 = inlined_call_operand.hbm [shape: bf16[256,128], index: 0, kind: input, shape index: {}]   ;;  %s738_s1 = inlined_call_operand.hbm [shape: bf16[128,128], index: 1, kind: input, shape index: {}]   ;;  %s739_s2 = inlined_call_operand.vmem [shape: f32[1,128], index: 2, kind: input, shape index: {}]   ;;  %s740_s3 = inlined_call_operand.hbm [shape: f32[256,128], index: 3, kind: output, shape index: {}]  }
   0x1   :  { %9 = vsyncpa [#allocation6], 0 }
   0x2   :  { %10 = vsyncpa [#allocation4], 0  ;;  %s664_s12 = smov [#allocation2]  }
   0x3   :  { %s16_s13 = sshll.u32 %s664_s12, 4  ;;  %s17_s13 = int_to_ptr.vmem [resolvable:$true] %s16_s13 }
   0x4   :  { %s606_s14 = scalar_lea.vmem %s17_s13, 2048  ;;  %p611_p1 = scmp.lt.s32.totalorder %s17_s13, %s17_s13 }
   0x5   :  { %p607_p0 = scmp.ne.s32.totalorder %s17_s13, %s606_s14  ;;  %p612_p2 = scmp.lt.s32.totalorder %s606_s14, %s606_s14 }
   0x7   :  { %p613_p3 = por %p612_p2, %p611_p1 }
   0x9   :  { %p614_p4 = pnand %p613_p3, %p607_p0 }
   0xb   :  { %617 = shalt.err (!%p614_p4)
}
   0xc   :  { %s665_s15 = smov 64   ;;  %s666_s16 = smov 4  }
   0xd   :  { %22 = dma.hbm_to_vmem [thread:$0]  %s737_s0, 2048, %s17_s13, [#allocation3], %s665_s15, %s665_s15, %s666_s16  }
   0xe   :  { %s667_s19 = smov [#allocation5]  }
   0xf   :  { %s28_s20 = sshll.u32 %s667_s19, 4  ;;  %s29_s20 = int_to_ptr.vmem [resolvable:$true] %s28_s20 }
  0x10   :  { %s626_s21 = scalar_lea.vmem %s29_s20, 1024  ;;  %p631_p6 = scmp.lt.s32.totalorder %s29_s20, %s29_s20 }
  0x11   :  { %p627_p5 = scmp.ne.s32.totalorder %s29_s20, %s626_s21  ;;  %p632_p7 = scmp.lt.s32.totalorder %s626_s21, %s626_s21 }
  0x13   :  { %p633_p8 = por %p632_p7, %p631_p6 }
  0x15   :  { %p634_p9 = pnand %p633_p8, %p627_p5 }
  0x17   :  { %637 = shalt.err (!%p634_p9)
}
  0x18   :  { %34 = dma.hbm_to_vmem [thread:$0]  %s738_s1, 1024, %s29_s20, [#allocation6], %s665_s15, %s665_s15, %s666_s16  }
  0x19   :  { %658 = dma.done.wait [#allocation3], 2048  }
  0x1a   :  { %659 = vsyncadd [#allocation3], 4294965248 }
  0x1b   :  { %660 = dma.done.wait [#allocation6], 1024  }
  0x1c   :  { %661 = vsyncadd [#allocation6], 4294966272  ;;  %v574_v0 = vld [vmem:[#allocation5 + $0x38] sm:$0xff]   ;;  %v575_v1 = vld [vmem:[#allocation5 + $0x30] sm:$0xff]  }
  0x1d   :  { %503 = vmatprep.subr.bf16.mxu0 %v574_v0  ;;  %551 = vmatprep.subr.bf16.mxu1 %v574_v0  ;;  %v576_v2 = vld [vmem:[#allocation5 + $0x28] sm:$0xff]   ;;  %v577_v3 = vld [vmem:[#allocation5 + $0x20] sm:$0xff]   ;;  %v578_v6 = vld [vmem:[#allocation5 + $0x18] sm:$0xff]  }
  0x1e   :  { %504 = vmatpush3.bf16.msra.mxu0 %v574_v0  ;;  %559 = vmatpush3.bf16.msra.mxu1 %v574_v0  ;;  %v582_v4 = vld [vmem:[#allocation2] sm:$0xff]   ;;  %v579_v7 = vld [vmem:[#allocation5 + $0x10] sm:$0xff]   ;;  %v580_v8 = vld [vmem:[#allocation5 + $0x8] sm:$0xff]  }
  0x1f   :  { %505 = vmatprep.subr.bf16.mxu0 %v575_v1  ;;  %552 = vmatprep.subr.bf16.mxu1 %v575_v1  ;;  %v583_v5 = vld [vmem:[#allocation2 + $0x40] sm:$0xff]   ;;  %v584_v10 = vld [vmem:[#allocation2 + $0x8] sm:$0xff]   ;;  %v586_v12 = vld [vmem:[#allocation2 + $0x10] sm:$0xff]  }
  0x20   :  { %519 = vmatprep.mubr.bf16.mxu0 %v582_v4  ;;  %535 = vmatprep.mubr.bf16.mxu1 %v583_v5  ;;  %v581_v9 = vld [vmem:[#allocation5] sm:$0xff]   ;;  %v585_v11 = vld [vmem:[#allocation2 + $0x48] sm:$0xff]   ;;  %v587_v13 = vld [vmem:[#allocation2 + $0x50] sm:$0xff]  }
  0x21   :  { %v588_v14 = vld [vmem:[#allocation2 + $0x18] sm:$0xff]   ;;  %v590_v16 = vld [vmem:[#allocation2 + $0x20] sm:$0xff]   ;;  %v592_v18 = vld [vmem:[#allocation2 + $0x28] sm:$0xff]  }
  0x22   :  { %506 = vmatpush3.bf16.msra.mxu0 %v575_v1  ;;  %560 = vmatpush3.bf16.msra.mxu1 %v575_v1  ;;  %v589_v15 = vld [vmem:[#allocation2 + $0x58] sm:$0xff]   ;;  %v591_v17 = vld [vmem:[#allocation2 + $0x60] sm:$0xff]   ;;  %v593_v19 = vld [vmem:[#allocation2 + $0x68] sm:$0xff]  }
  0x23   :  { %507 = vmatprep.subr.bf16.mxu0 %v576_v2  ;;  %553 = vmatprep.subr.bf16.mxu1 %v576_v2  ;;  %v594_v20 = vld [vmem:[#allocation2 + $0x30] sm:$0xff]   ;;  %v596_v22 = vld [vmem:[#allocation2 + $0x38] sm:$0xff]   ;;  %v700_v24 = vld [vmem:[%s739_s2] ss:$0 sm:$0xff]  ;;  %s668_s2 = smov [#allocation7]  }
  0x24   :  { %v595_v21 = vld [vmem:[#allocation2 + $0x70] sm:$0xff]   ;;  %v597_v23 = vld [vmem:[#allocation2 + $0x78] sm:$0xff]   ;;  %s441_s24 = sshll.u32 %s668_s2, 4  ;;  %s442_s24 = int_to_ptr.vmem [resolvable:$true] %s441_s24 }
  0x25   :  { %s638_s25 = scalar_lea.vmem %s442_s24, 4096  ;;  %p643_p11 = scmp.lt.s32.totalorder %s442_s24, %s442_s24 }
  0x26   :  { %508 = vmatpush3.bf16.msra.mxu0 %v576_v2  ;;  %561 = vmatpush3.bf16.msra.mxu1 %v576_v2  ;;  %p639_p10 = scmp.ne.s32.totalorder %s442_s24, %s638_s25  ;;  %p644_p12 = scmp.lt.s32.totalorder %s638_s25, %s638_s25 }
  0x27   :  { %509 = vmatprep.subr.bf16.mxu0 %v577_v3  ;;  %554 = vmatprep.subr.bf16.mxu1 %v577_v3 }
  0x28   :  { %p645_p13 = por %p644_p12, %p643_p11 }
  0x2a   :  { %510 = vmatpush3.bf16.msra.mxu0 %v577_v3  ;;  %562 = vmatpush3.bf16.msra.mxu1 %v577_v3  ;;  %p646_p0 = pnand %p645_p13, %p639_p10 }
  0x2b   :  { %511 = vmatprep.subr.bf16.mxu0 %v578_v6  ;;  %555 = vmatprep.subr.bf16.mxu1 %v578_v6 }
  0x2e   :  { %512 = vmatpush3.bf16.msra.mxu0 %v578_v6  ;;  %563 = vmatpush3.bf16.msra.mxu1 %v578_v6 }
  0x2f   :  { %513 = vmatprep.subr.bf16.mxu0 %v579_v7  ;;  %556 = vmatprep.subr.bf16.mxu1 %v579_v7 }
  0x32   :  { %514 = vmatpush3.bf16.msra.mxu0 %v579_v7  ;;  %564 = vmatpush3.bf16.msra.mxu1 %v579_v7 }
  0x33   :  { %515 = vmatprep.subr.bf16.mxu0 %v580_v8  ;;  %557 = vmatprep.subr.bf16.mxu1 %v580_v8 }
  0x36   :  { %516 = vmatpush3.bf16.msra.mxu0 %v580_v8  ;;  %565 = vmatpush3.bf16.msra.mxu1 %v580_v8 }
  0x37   :  { %517 = vmatprep.subr.bf16.mxu0 %v581_v9  ;;  %558 = vmatprep.subr.bf16.mxu1 %v581_v9 }
  0x3a   :  { %518 = vmatpush3.bf16.msra.mxu0 %v581_v9  ;;  %566 = vmatpush3.bf16.msra.mxu1 %v581_v9 }
  0x3d   :  { %520 = vmatmul.mubr.bf16.vlgmr.msra.gmra.mxu0 %v584_v10  ;;  %536 = vmatmul.mubr.bf16.vlgmr.msra.gmra.mxu1 %v585_v11 }
  0x3e   :  { %523 = vmatprep.mubr.bf16.mxu0 %v586_v12  ;;  %539 = vmatprep.mubr.bf16.mxu1 %v587_v13 }
  0x45   :  { %524 = vmatmul.mubr.bf16.gmra.mxu0 %v588_v14  ;;  %540 = vmatmul.mubr.bf16.gmra.mxu1 %v589_v15 }
  0x46   :  { %527 = vmatprep.mubr.bf16.mxu0 %v590_v16  ;;  %543 = vmatprep.mubr.bf16.mxu1 %v591_v17 }
  0x4d   :  { %528 = vmatmul.mubr.bf16.gmra.mxu0 %v592_v18  ;;  %544 = vmatmul.mubr.bf16.gmra.mxu1 %v593_v19 }
  0x4e   :  { %531 = vmatprep.mubr.bf16.mxu0 %v594_v20  ;;  %547 = vmatprep.mubr.bf16.mxu1 %v595_v21 }
  0x55   :  { %532 = vmatmul.mubr.bf16.gmra.mxu0 %v596_v22  ;;  %548 = vmatmul.mubr.bf16.gmra.mxu1 %v597_v23 }
  0xfd   :  { %v521_v25 = vpop.f32.mrf.mxu0  ;;  %v537_v26 = vpop.f32.mrf.mxu1 }
  0xfe   :  { %v286_v27 = vadd.f32 %v521_v25, %v700_v24  ;;  %v350_v28 = vadd.f32 %v537_v26, %v700_v24 }
  0xff   :  { %v277_v29 = vpop.f32.mrf.mxu0  ;;  %v341_v30 = vpop.f32.mrf.mxu1 }
 0x100   :  { %406 = vst [vmem:[#allocation7 + $0x10] sm:$0xff] %v286_v27  ;;  %422 = vst [vmem:[#allocation7 + $0x90] sm:$0xff] %v350_v28  ;;  %v278_v31 = vadd.f32 %v700_v24, %v277_v29  ;;  %v342_v32 = vadd.f32 %v700_v24, %v341_v30 }
 0x101   :  { %v522_v33 = vpop.f32.mrf.mxu0  ;;  %v538_v34 = vpop.f32.mrf.mxu1 }
 0x102   :  { %404 = vst [vmem:[#allocation7] sm:$0xff] %v278_v31  ;;  %420 = vst [vmem:[#allocation7 + $0x80] sm:$0xff] %v342_v32  ;;  %v289_v35 = vadd.f32 %v522_v33, %v700_v24  ;;  %v353_v36 = vadd.f32 %v538_v34, %v700_v24 }
 0x103   :  { %v280_v37 = vpop.f32.mrf.mxu0  ;;  %v344_v38 = vpop.f32.mrf.mxu1 }
 0x104   :  { %407 = vst [vmem:[#allocation7 + $0x18] sm:$0xff] %v289_v35  ;;  %423 = vst [vmem:[#allocation7 + $0x98] sm:$0xff] %v353_v36  ;;  %v281_v39 = vadd.f32 %v700_v24, %v280_v37  ;;  %v345_v40 = vadd.f32 %v700_v24, %v344_v38 }
 0x105   :  { %v525_v41 = vpop.f32.mrf.mxu0  ;;  %v541_v42 = vpop.f32.mrf.mxu1 }
 0x106   :  { %405 = vst [vmem:[#allocation7 + $0x8] sm:$0xff] %v281_v39  ;;  %421 = vst [vmem:[#allocation7 + $0x88] sm:$0xff] %v345_v40  ;;  %v302_v43 = vadd.f32 %v525_v41, %v700_v24  ;;  %v366_v44 = vadd.f32 %v541_v42, %v700_v24 }
 0x107   :  { %v293_v45 = vpop.f32.mrf.mxu0  ;;  %v357_v46 = vpop.f32.mrf.mxu1 }
 0x108   :  { %410 = vst [vmem:[#allocation7 + $0x30] sm:$0xff] %v302_v43  ;;  %426 = vst [vmem:[#allocation7 + $0xb0] sm:$0xff] %v366_v44  ;;  %v294_v47 = vadd.f32 %v700_v24, %v293_v45  ;;  %v358_v48 = vadd.f32 %v700_v24, %v357_v46 }
 0x109   :  { %v526_v49 = vpop.f32.mrf.mxu0  ;;  %v542_v50 = vpop.f32.mrf.mxu1 }
 0x10a   :  { %408 = vst [vmem:[#allocation7 + $0x20] sm:$0xff] %v294_v47  ;;  %424 = vst [vmem:[#allocation7 + $0xa0] sm:$0xff] %v358_v48  ;;  %v305_v51 = vadd.f32 %v526_v49, %v700_v24  ;;  %v369_v52 = vadd.f32 %v542_v50, %v700_v24 }
 0x10b   :  { %v296_v53 = vpop.f32.mrf.mxu0  ;;  %v360_v54 = vpop.f32.mrf.mxu1 }
 0x10c   :  { %411 = vst [vmem:[#allocation7 + $0x38] sm:$0xff] %v305_v51  ;;  %427 = vst [vmem:[#allocation7 + $0xb8] sm:$0xff] %v369_v52  ;;  %v297_v55 = vadd.f32 %v700_v24, %v296_v53  ;;  %v361_v56 = vadd.f32 %v700_v24, %v360_v54 }
 0x10d   :  { %v529_v57 = vpop.f32.mrf.mxu0  ;;  %v545_v58 = vpop.f32.mrf.mxu1 }
 0x10e   :  { %409 = vst [vmem:[#allocation7 + $0x28] sm:$0xff] %v297_v55  ;;  %425 = vst [vmem:[#allocation7 + $0xa8] sm:$0xff] %v361_v56  ;;  %v318_v59 = vadd.f32 %v529_v57, %v700_v24  ;;  %v382_v60 = vadd.f32 %v545_v58, %v700_v24 }
 0x10f   :  { %v309_v61 = vpop.f32.mrf.mxu0  ;;  %v373_v62 = vpop.f32.mrf.mxu1 }
 0x110   :  { %414 = vst [vmem:[#allocation7 + $0x50] sm:$0xff] %v318_v59  ;;  %430 = vst [vmem:[#allocation7 + $0xd0] sm:$0xff] %v382_v60  ;;  %v310_v63 = vadd.f32 %v700_v24, %v309_v61  ;;  %v374_v0 = vadd.f32 %v700_v24, %v373_v62 }
 0x111   :  { %v530_v1 = vpop.f32.mrf.mxu0  ;;  %v546_v2 = vpop.f32.mrf.mxu1 }
 0x112   :  { %412 = vst [vmem:[#allocation7 + $0x40] sm:$0xff] %v310_v63  ;;  %428 = vst [vmem:[#allocation7 + $0xc0] sm:$0xff] %v374_v0  ;;  %v321_v3 = vadd.f32 %v530_v1, %v700_v24  ;;  %v385_v4 = vadd.f32 %v546_v2, %v700_v24 }
 0x113   :  { %v312_v5 = vpop.f32.mrf.mxu0  ;;  %v376_v6 = vpop.f32.mrf.mxu1 }
 0x114   :  { %415 = vst [vmem:[#allocation7 + $0x58] sm:$0xff] %v321_v3  ;;  %431 = vst [vmem:[#allocation7 + $0xd8] sm:$0xff] %v385_v4  ;;  %v313_v7 = vadd.f32 %v700_v24, %v312_v5  ;;  %v377_v8 = vadd.f32 %v700_v24, %v376_v6 }
 0x115   :  { %v533_v9 = vpop.f32.mrf.mxu0  ;;  %v549_v10 = vpop.f32.mrf.mxu1 }
 0x116   :  { %413 = vst [vmem:[#allocation7 + $0x48] sm:$0xff] %v313_v7  ;;  %429 = vst [vmem:[#allocation7 + $0xc8] sm:$0xff] %v377_v8  ;;  %v334_v11 = vadd.f32 %v533_v9, %v700_v24  ;;  %v398_v12 = vadd.f32 %v549_v10, %v700_v24 }
 0x117   :  { %v325_v13 = vpop.f32.mrf.mxu0  ;;  %v389_v14 = vpop.f32.mrf.mxu1 }
 0x118   :  { %418 = vst [vmem:[#allocation7 + $0x70] sm:$0xff] %v334_v11  ;;  %434 = vst [vmem:[#allocation7 + $0xf0] sm:$0xff] %v398_v12  ;;  %v326_v15 = vadd.f32 %v700_v24, %v325_v13  ;;  %v390_v16 = vadd.f32 %v700_v24, %v389_v14 }
 0x119   :  { %v534_v17 = vpop.f32.mrf.mxu0  ;;  %v550_v18 = vpop.f32.mrf.mxu1 }
 0x11a   :  { %416 = vst [vmem:[#allocation7 + $0x60] sm:$0xff] %v326_v15  ;;  %432 = vst [vmem:[#allocation7 + $0xe0] sm:$0xff] %v390_v16  ;;  %v337_v19 = vadd.f32 %v534_v17, %v700_v24  ;;  %v401_v20 = vadd.f32 %v550_v18, %v700_v24 }
 0x11b   :  { %v328_v21 = vpop.f32.mrf.mxu0  ;;  %v392_v22 = vpop.f32.mrf.mxu1 }
 0x11c   :  { %419 = vst [vmem:[#allocation7 + $0x78] sm:$0xff] %v337_v19  ;;  %435 = vst [vmem:[#allocation7 + $0xf8] sm:$0xff] %v401_v20  ;;  %v329_v23 = vadd.f32 %v700_v24, %v328_v21  ;;  %v393_v25 = vadd.f32 %v700_v24, %v392_v22 }
 0x11e   :  { %417 = vst [vmem:[#allocation7 + $0x68] sm:$0xff] %v329_v23  ;;  %433 = vst [vmem:[#allocation7 + $0xe8] sm:$0xff] %v393_v25 }
 0x11f   :  { %649 = shalt.err (!%p646_p0)
}
 0x120   :  { %s669_s26 = smov 128   ;;  %s670_s27 = smov 8  }
 0x121   :  { %447 = dma.vmem_to_hbm [thread:$0]  %s442_s24, 4096, %s740_s3, [#allocation4], %s669_s26, %s669_s26, %s670_s27  }
 0x122   :  { %662 = dma.done.wait [#allocation4], 4096  }
 0x123   :  { %663 = vsyncadd [#allocation4], 4294963200 }
 0x124   :  { %451 = vsyncpa [#allocation3], 1 }
 0x125   :  { %452 = vsyncpa [#allocation6], 1 }
 0x126   :  { %453 = vsyncpa [#allocation4], 1 }

</bundles_post_ra>
